<compile_context>
chip_gen: v7x
topology: tpu7x:2x2x1
jax: 0.10.0
libtpu: 0.0.40
codegen_flags: <defaults>
</compile_context>

<pallas_src>
import jax
import jax.numpy as jnp
from jax.experimental import pallas as pl
from jax.experimental.pallas import tpu as pltpu


def _round_up(x, m):
    return ((x + m - 1) // m) * m


def bow_kernel(x_ref, w_ref, b_ref, o_ref, acc_ref):
    k = pl.program_id(1)

    # Zero the accumulator at the start of the vocab reduction.
    @pl.when(k == 0)
    def _():
        acc_ref[...] = jnp.zeros_like(acc_ref)

    # Partial matmul for this vocab tile (MXU, f32 accumulation).
    acc_ref[...] += jnp.dot(
        x_ref[...], w_ref[...], preferred_element_type=jnp.float32
    )

    # Finalize: bias add + numerically-stable log_softmax along labels (dim=1).
    @pl.when(k == pl.num_programs(1) - 1)
    def _():
        logits = acc_ref[...] + b_ref[...]
        m = jnp.max(logits, axis=-1, keepdims=True)
        shifted = logits - m
        lse = jnp.log(jnp.sum(jnp.exp(shifted), axis=-1, keepdims=True))
        o_ref[...] = (shifted - lse).astype(o_ref.dtype)


def bow_forward(x, weight, bias, *, use_bf16=False, tb_max=256, tv_max=512):
    """Forward pass of BoW: log_softmax(x @ weight.T + bias, axis=1).

    x:      (B, V) f32 bag-of-words counts
    weight: (L, V) f32 (PyTorch nn.Linear layout)
    bias:   (L,)   f32
    returns (B, L) f32
    """
    B, V = x.shape
    L = weight.shape[0]

    # Lane-dense label axis: pad labels up to a multiple of 128 (min 128).
    LP = _round_up(max(L, 128), 128)

    # Tile sizes.  bf16 packs 2 rows/sublane -> min sublane tile 16.
    sub = 16 if use_bf16 else 8
    TB = min(_round_up(tb_max, sub), _round_up(B, sub))
    TV = min(_round_up(tv_max, 128), _round_up(V, 128))
    Bp = _round_up(B, TB)
    Vp = _round_up(V, TV)

    # Weight pre-transposed & zero-padded (extra vocab rows / label cols = 0).
    w_t = jnp.zeros((Vp, LP), dtype=jnp.float32).at[:V, :L].set(weight.T)
    # Padded label bias entries get a huge negative value: exp() -> 0, so the
    # softmax over the real L labels is numerically identical.
    b_p = jnp.full((1, LP), -1e30, dtype=jnp.float32).at[0, :L].set(bias)
    x_p = jnp.zeros((Bp, Vp), dtype=jnp.float32).at[:B, :V].set(x)

    if use_bf16:
        x_p = x_p.astype(jnp.bfloat16)
        w_t = w_t.astype(jnp.bfloat16)

    grid = (Bp // TB, Vp // TV)

    out = pl.pallas_call(
        bow_kernel,
        out_shape=jax.ShapeDtypeStruct((Bp, LP), jnp.float32),
        grid=grid,
        in_specs=[
            pl.BlockSpec((TB, TV), lambda i, k: (i, k)),   # x tile
            pl.BlockSpec((TV, LP), lambda i, k: (k, 0)),   # weight tile
            pl.BlockSpec((1, LP), lambda i, k: (0, 0)),    # bias (resident)
        ],
        out_specs=pl.BlockSpec((TB, LP), lambda i, k: (i, 0)),
        scratch_shapes=[pltpu.VMEM((TB, LP), jnp.float32)],
        compiler_params=pltpu.CompilerParams(
            dimension_semantics=("parallel", "arbitrary"),
        ),
    )(x_p, w_t, b_p)

    return out[:B, :L]


def reference(x, weight, bias):
    logits = x @ weight.T + bias[None, :]
    return jax.nn.log_softmax(logits, axis=1)


if __name__ == "__main__":
    # Small shapes consistent with the module: batch=8, vocab=128, labels=16.
    B, VOCAB, LABELS = 8, 128, 16

    key = jax.random.PRNGKey(0)
    kx, kw, kb = jax.random.split(key, 3)

    bound = 1.0 / (VOCAB ** 0.5)
    weight = jax.random.uniform(
        kw, (LABELS, VOCAB), jnp.float32, minval=-bound, maxval=bound
    )
    bias = jax.random.uniform(
        kb, (LABELS,), jnp.float32, minval=-bound, maxval=bound
    )
    x = jax.random.randint(kx, (B, VOCAB), 0, 5).astype(jnp.float32)

    # f32 path (exact semantics of the PyTorch module).
    out = bow_forward(x, weight, bias)
    jax.block_until_ready(out)
    ref = reference(x, weight, bias)
    assert out.shape == (B, LABELS)
    assert jnp.allclose(out, ref, atol=1e-5, rtol=1e-5)

    # Multi-tile check: exercises batch tiling + vocab-reduction accumulator.
    B2, V2, L2 = 24, 384, 16
    k2x, k2w, k2b = jax.random.split(jax.random.PRNGKey(1), 3)
    bound2 = 1.0 / (V2 ** 0.5)
    w2 = jax.random.uniform(k2w, (L2, V2), jnp.float32, minval=-bound2, maxval=bound2)
    b2 = jax.random.uniform(k2b, (L2,), jnp.float32, minval=-bound2, maxval=bound2)
    x2 = jax.random.randint(k2x, (B2, V2), 0, 5).astype(jnp.float32)

    out2 = bow_forward(x2, w2, b2, tb_max=8, tv_max=128)   # grid = (3, 3)
    jax.block_until_ready(out2)
    ref2 = reference(x2, w2, b2)
    assert jnp.allclose(out2, ref2, atol=1e-5, rtol=1e-5)

    # bf16 DMA/MXU path (f32 accumulation + f32 softmax), looser tolerance.
    out3 = bow_forward(x2, w2, b2, use_bf16=True, tb_max=16, tv_max=128)
    jax.block_until_ready(out3)
    assert jnp.allclose(out3, ref2, atol=1e-1)

    print("KERNEL_OK")
</pallas_src>

<mosaic_0001>
module attributes {stable_mosaic.version = 11 : i64} {
  func.func @bow_kernel(%arg0: i32, %arg1: i32, %arg2: memref<8x128xf32, #tpu.memory_space<vmem>>, %arg3: memref<128x128xf32, #tpu.memory_space<vmem>>, %arg4: memref<1x128xf32, #tpu.memory_space<vmem>>, %arg5: memref<8x128xf32, #tpu.memory_space<vmem>>, %arg6: memref<8x128xf32, #tpu.memory_space<vmem>>) attributes {dimension_semantics = [#tpu.dimension_semantics<parallel>, #tpu.dimension_semantics<arbitrary>], iteration_bounds = array<i64: 1, 1>, scalar_prefetch = 0 : i64, scratch_operands = 1 : i64, tpu.core_type = #tpu.core_type<tc>, window_params = [{transform_indices = @transform_0, window_bounds = array<i64: 8, 128>}, {transform_indices = @transform_1, window_bounds = array<i64: 128, 128>}, {pipeline_mode = #tpu.pipeline_mode<synchronous>, transform_indices = @transform_2, window_bounds = array<i64: 1, 128>}, {transform_indices = @transform_3, window_bounds = array<i64: 8, 128>}]} {
    %c0_i32 = arith.constant 0 : i32
    %0 = arith.cmpi eq, %arg1, %c0_i32 : i32
    %1 = arith.extui %0 : i1 to i32
    %c0_i32_0 = arith.constant 0 : i32
    %2 = arith.cmpi ne, %1, %c0_i32_0 : i32
    scf.if %2 {
      %cst_10 = arith.constant 0.000000e+00 : f32
      %12 = vector.broadcast %cst_10 : f32 to vector<8x128xf32>
      %c0_11 = arith.constant 0 : index
      %c0_12 = arith.constant 0 : index
      %13 = vector.load %arg6[%c0_11, %c0_12] : memref<8x128xf32, #tpu.memory_space<vmem>>, vector<8x128xf32>
      tpu.vector_store %arg6[%c0_11, %c0_12], %12 {strides = array<i32>} : memref<8x128xf32, #tpu.memory_space<vmem>>, vector<8x128xf32>,
    } else {
    }
    %c0 = arith.constant 0 : index
    %c0_1 = arith.constant 0 : index
    %3 = vector.load %arg6[%c0, %c0_1] : memref<8x128xf32, #tpu.memory_space<vmem>>, vector<8x128xf32>
    %c0_2 = arith.constant 0 : index
    %c0_3 = arith.constant 0 : index
    %4 = vector.load %arg2[%c0_2, %c0_3] : memref<8x128xf32, #tpu.memory_space<vmem>>, vector<8x128xf32>
    %c0_4 = arith.constant 0 : index
    %c0_5 = arith.constant 0 : index
    %5 = vector.load %arg3[%c0_4, %c0_5] : memref<128x128xf32, #tpu.memory_space<vmem>>, vector<128x128xf32>
    %cst = arith.constant dense<0.000000e+00> : vector<8x128xf32>
    %6 = tpu.matmul %4, %5, %cst {dimension_numbers = #tpu.dot_dimension_numbers<[1], [0], [0], [1], [0, 0, 1, 1], [], []>} : vector<8x128xf32>, vector<128x128xf32>, vector<8x128xf32> -> vector<8x128xf32>
    %7 = arith.addf %3, %6 : vector<8x128xf32>
    %c0_6 = arith.constant 0 : index
    %c0_7 = arith.constant 0 : index
    %8 = vector.load %arg6[%c0_6, %c0_7] : memref<8x128xf32, #tpu.memory_space<vmem>>, vector<8x128xf32>
    tpu.vector_store %arg6[%c0_6, %c0_7], %7 {strides = array<i32>} : memref<8x128xf32, #tpu.memory_space<vmem>>, vector<8x128xf32>,
    %c0_i32_8 = arith.constant 0 : i32
    %9 = arith.cmpi eq, %arg1, %c0_i32_8 : i32
    %10 = arith.extui %9 : i1 to i32
    %c0_i32_9 = arith.constant 0 : i32
    %11 = arith.cmpi ne, %10, %c0_i32_9 : i32
    scf.if %11 {
      %c0_10 = arith.constant 0 : index
      %c0_11 = arith.constant 0 : index
      %12 = vector.load %arg6[%c0_10, %c0_11] : memref<8x128xf32, #tpu.memory_space<vmem>>, vector<8x128xf32>
      %c0_12 = arith.constant 0 : index
      %c0_13 = arith.constant 0 : index
      %13 = vector.load %arg4[%c0_12, %c0_13] : memref<1x128xf32, #tpu.memory_space<vmem>>, vector<1x128xf32>
      %14 = vector.broadcast %13 : vector<1x128xf32> to vector<8x128xf32>
      %15 = arith.addf %12, %14 : vector<8x128xf32>
      %cst_14 = arith.constant dense<0xFF800000> : vector<8xf32>
      %16 = vector.multi_reduction <maximumf>, %15, %cst_14 [1] : vector<8x128xf32> to vector<8xf32>
      %17 = vector.shape_cast %16 : vector<8xf32> to vector<8x1xf32>
      %18 = vector.broadcast %17 : vector<8x1xf32> to vector<8x128xf32>
      %19 = arith.subf %15, %18 : vector<8x128xf32>
      %20 = math.exp %19 : vector<8x128xf32>
      %cst_15 = arith.constant dense<0.000000e+00> : vector<8xf32>
      %21 = vector.multi_reduction <add>, %20, %cst_15 [1] : vector<8x128xf32> to vector<8xf32>
      %22 = vector.shape_cast %21 : vector<8xf32> to vector<8x1xf32>
      %23 = math.log %22 : vector<8x1xf32>
      %24 = vector.broadcast %23 : vector<8x1xf32> to vector<8x128xf32>
      %25 = arith.subf %19, %24 : vector<8x128xf32>
      %c0_16 = arith.constant 0 : index
      %c0_17 = arith.constant 0 : index
      %26 = vector.load %arg5[%c0_16, %c0_17] : memref<8x128xf32, #tpu.memory_space<vmem>>, vector<8x128xf32>
      tpu.vector_store %arg5[%c0_16, %c0_17], %25 {strides = array<i32>} : memref<8x128xf32, #tpu.memory_space<vmem>>, vector<8x128xf32>,
    } else {
    }
    return
  }
  func.func @transform_0(%arg0: i32, %arg1: i32) -> (i32, i32) {
    %c0_i32 = arith.constant 0 : i32
    return %arg0, %arg1 : i32, i32
  }
  func.func @transform_1(%arg0: i32, %arg1: i32) -> (i32, i32) {
    %c0_i32 = arith.constant 0 : i32
    %c0_i32_0 = arith.constant 0 : i32
    return %arg1, %c0_i32 : i32, i32
  }
  func.func @transform_2(%arg0: i32, %arg1: i32) -> (i32, i32) {
    %c0_i32 = arith.constant 0 : i32
    %c0_i32_0 = arith.constant 0 : i32
    %c0_i32_1 = arith.constant 0 : i32
    return %c0_i32, %c0_i32_0 : i32, i32
  }
  func.func @transform_3(%arg0: i32, %arg1: i32) -> (i32, i32) {
    %c0_i32 = arith.constant 0 : i32
    %c0_i32_0 = arith.constant 0 : i32
    return %arg0, %c0_i32 : i32, i32
  }
}

</mosaic_0001>

<bundles_post_ra>
// kernel: tpu_custom_call.1
= control target key start
LH: loop header
LB: loop body
LE: loop exit
PB: predicated region body
PF: predicated region fallthrough
CT: control target
= control target key end

     0   :  { %8 = vsyncpa [#allocation4], 0  ;;  %s410_s0 = inlined_call_operand.hbm [shape: f32[8,128], index: 0, kind: input, shape index: {}]   ;;  %s411_s1 = inlined_call_operand.hbm [shape: f32[128,128], index: 1, kind: input, shape index: {}]   ;;  %s412_s2 = inlined_call_operand.vmem [shape: f32[1,128], index: 2, kind: input, shape index: {}]   ;;  %s413_s3 = inlined_call_operand.hbm [shape: f32[8,128], index: 3, kind: output, shape index: {}]  }
   0x1   :  { %9 = vsyncpa [#allocation7], 0 }
   0x2   :  { %10 = vsyncpa [#allocation5], 0  ;;  %s336_s12 = smov [#allocation3]   ;;  %s337_s14 = smov [#allocation6]  }
   0x3   :  { %s17_s13 = sshll.u32 %s336_s12, 4  ;;  %s26_s15 = sshll.u32 %s337_s14, 4  ;;  %s18_s13 = int_to_ptr.vmem [resolvable:$true] %s17_s13  ;;  %s364_s15 = int_to_ptr.vmem [resolvable:$true] %s26_s15 }
   0x4   :  { %s264_s18 = scalar_lea.hbm %s410_s0, 128 }
   0x5   :  { %p265_p0 = scmp.ne.s32.totalorder %s410_s0, %s264_s18  ;;  %p268_p1 = scmp.lt.u32.totalorder %s264_s18, %s410_s0 }
   0x7   :  { %p270_p2 = pnand %p268_p1, %p265_p0 }
   0x9   :  { %273 = shalt.err (!%p270_p2)
}
   0xa   :  { %s274_s23 = scalar_lea.vmem %s18_s13, 128  ;;  %p279_p4 = scmp.lt.s32.totalorder %s18_s13, %s18_s13 }
   0xb   :  { %p275_p3 = scmp.ne.s32.totalorder %s18_s13, %s274_s23  ;;  %p280_p5 = scmp.lt.s32.totalorder %s274_s23, %s274_s23 }
   0xd   :  { %p281_p6 = por %p280_p5, %p279_p4 }
   0xf   :  { %p282_p7 = pnand %p281_p6, %p275_p3 }
  0x11   :  { %285 = shalt.err (!%p282_p7)
}
  0x12   :  { %20 = dma.hbm_to_vmem [thread:$0]  %s410_s0, 128, %s18_s13, [#allocation4]  }
  0x13   :  { %s286_s28 = scalar_lea.hbm %s411_s1, 2048 }
  0x14   :  { %p287_p8 = scmp.ne.s32.totalorder %s411_s1, %s286_s28  ;;  %p290_p9 = scmp.lt.u32.totalorder %s286_s28, %s411_s1 }
  0x16   :  { %p292_p10 = pnand %p290_p9, %p287_p8 }
  0x18   :  { %295 = shalt.err (!%p292_p10)
}
  0x19   :  { %s296_s6 = scalar_lea.vmem %s364_s15, 2048  ;;  %p301_p12 = scmp.lt.s32.totalorder %s364_s15, %s364_s15 }
  0x1a   :  { %p297_p11 = scmp.ne.s32.totalorder %s364_s15, %s296_s6  ;;  %p302_p13 = scmp.lt.s32.totalorder %s296_s6, %s296_s6 }
  0x1c   :  { %p303_p0 = por %p302_p13, %p301_p12 }
  0x1e   :  { %p304_p1 = pnand %p303_p0, %p297_p11 }
  0x20   :  { %307 = shalt.err (!%p304_p1)
}
  0x21   :  { %s338_s0 = smov 128   ;;  %s339_s7 = smov 8  }
  0x22   :  { %32 = dma.hbm_to_vmem [thread:$0]  %s411_s1, 2048, %s364_s15, [#allocation7], %s338_s0, %s338_s0, %s339_s7  }
  0x23   :  { %330 = dma.done.wait [#allocation4], 128  }
  0x24   :  { %331 = vsyncadd [#allocation4], 4294967168 }
  0x25   :  { %332 = dma.done.wait [#allocation7], 2048  }
  0x26   :  { %333 = vsyncadd [#allocation7], 4294965248  ;;  %v340_v0 = vmov 0.0|0.0   ;;  %vm341_vm0 = vmmov 0   ;;  %v342_v1 = vmov 0.0   ;;  %v48_v2 = vld [vmem:[#allocation6] sm:$0xff] }
  0x27   :  { %228 = vmatprep.subr.bf16.mxu0 %v340_v0  ;;  %225 = vmatprep.mubr.msk.f32.mxu0 %vm341_vm0, %v342_v1  ;;  %v49_v3 = vld [vmem:[#allocation6 + $0x8] sm:$0xff]  ;;  %v50_v4 = vld [vmem:[#allocation6 + $0x10] sm:$0xff]  ;;  %v51_v6 = vld [vmem:[#allocation6 + $0x18] sm:$0xff]  ;;  %s343_s11 = smov [#allocation8]  }
  0x28   :  { %v229_v5 = vpack.c.bf16 %v49_v3, %v48_v2  ;;  %v232_v7 = vpack.c.bf16 %v51_v6, %v50_v4  ;;  %v52_v8 = vld [vmem:[#allocation6 + $0x20] sm:$0xff]  ;;  %v53_v9 = vld [vmem:[#allocation6 + $0x28] sm:$0xff]  ;;  %v54_v11 = vld [vmem:[#allocation6 + $0x30] sm:$0xff]  ;;  %s165_s12 = sshll.u32 %s343_s11, 4  ;;  %s166_s12 = int_to_ptr.vmem [resolvable:$true] %s165_s12 }
  0x29   :  { %v235_v10 = vpack.c.bf16 %v53_v9, %v52_v8  ;;  %v55_v12 = vld [vmem:[#allocation6 + $0x38] sm:$0xff]  ;;  %v56_v14 = vld [vmem:[#allocation6 + $0x40] sm:$0xff]  ;;  %v57_v15 = vld [vmem:[#allocation6 + $0x48] sm:$0xff]  ;;  %p313_p3 = scmp.lt.s32.totalorder %s166_s12, %s166_s12 }
  0x2a   :  { %230 = vmatpush3.bf16.msra.mxu0 %v229_v5  ;;  %v238_v13 = vpack.c.bf16 %v55_v12, %v54_v11  ;;  %v241_v16 = vpack.c.bf16 %v57_v15, %v56_v14  ;;  %v58_v17 = vld [vmem:[#allocation6 + $0x50] sm:$0xff]  ;;  %v59_v18 = vld [vmem:[#allocation6 + $0x58] sm:$0xff]  ;;  %v60_v20 = vld [vmem:[#allocation6 + $0x60] sm:$0xff] }
  0x2b   :  { %231 = vmatprep.subr.bf16.mxu0 %v340_v0  ;;  %v244_v19 = vpack.c.bf16 %v59_v18, %v58_v17  ;;  %v61_v21 = vld [vmem:[#allocation6 + $0x68] sm:$0xff]  ;;  %v62_v23 = vld [vmem:[#allocation6 + $0x70] sm:$0xff]  ;;  %v63_v24 = vld [vmem:[#allocation6 + $0x78] sm:$0xff] }
  0x2c   :  { %v247_v22 = vpack.c.bf16 %v61_v21, %v60_v20  ;;  %v250_v25 = vpack.c.bf16 %v63_v24, %v62_v23  ;;  %v47_v26 = vld [vmem:[#allocation3] sm:$0xff] }
  0x2d   :  { %v175_v27 = vld [vmem:[%s412_s2] ss:$0 sm:$0xff]  ;;  %s308_s2 = scalar_lea.vmem %s166_s12, 128 }
  0x2e   :  { %233 = vmatpush3.bf16.msra.mxu0 %v232_v7  ;;  %p309_p2 = scmp.ne.s32.totalorder %s166_s12, %s308_s2  ;;  %p314_p4 = scmp.lt.s32.totalorder %s308_s2, %s308_s2 }
  0x2f   :  { %234 = vmatprep.subr.bf16.mxu0 %v340_v0 }
  0x30   :  { %p315_p5 = por %p314_p4, %p313_p3 }
  0x32   :  { %236 = vmatpush3.bf16.msra.mxu0 %v235_v10  ;;  %p316_p6 = pnand %p315_p5, %p309_p2 }
  0x33   :  { %237 = vmatprep.subr.bf16.mxu0 %v340_v0 }
  0x36   :  { %239 = vmatpush3.bf16.msra.mxu0 %v238_v13 }
  0x37   :  { %240 = vmatprep.subr.bf16.mxu0 %v340_v0 }
  0x3a   :  { %242 = vmatpush3.bf16.msra.mxu0 %v241_v16 }
  0x3b   :  { %243 = vmatprep.subr.bf16.mxu0 %v340_v0 }
  0x3e   :  { %245 = vmatpush3.bf16.msra.mxu0 %v244_v19 }
  0x3f   :  { %246 = vmatprep.subr.bf16.mxu0 %v340_v0 }
  0x42   :  { %248 = vmatpush3.bf16.msra.mxu0 %v247_v22 }
  0x43   :  { %249 = vmatprep.subr.bf16.mxu0 %v340_v0 }
  0x46   :  { %251 = vmatpush3.bf16.msra.mxu0 %v250_v25 }
  0x49   :  { %226 = vmatmul.mubr.f32.vlgmr.msra.gmra.mrb[0].mxu0 %v47_v26 }
 0x11c   :  { %v130_v28 = vpop.f32.mrb[0].mxu0 }
 0x11d   :  { %v147_v29 = vadd.f32 %v175_v27, %v130_v28  ;;  %v227_v30 = vpop.f32.mrb[1].mxu0 }
 0x11f   :  { %148 = vmax.xlane.f32.xlu0 %v147_v29 }
 0x1ac   :  { %v149_v31 = vpop.xlane.xlu0 %148 }
 0x1ad   :  { %v150_v32 = vsub.f32 %v147_v29, %v149_v31 }
 0x1af   :  { %v151_v33 = vmul.f32 1.442695, %v150_v32 }
 0x1b1   :  { %260 = vpow2.f32 %v151_v33 }
 0x1bb   :  { %v261_v34 = vpop.eup %260 }
 0x1bc   :  { %153 = vadd.xlane.f32.xlu0 %v261_v34 }
 0x249   :  { %v154_v35 = vpop.xlane.xlu0 %153 }
 0x24a   :  { %262 = vlog2.f32 %v154_v35 }
 0x254   :  { %v263_v36 = vpop.eup %262 }
 0x255   :  { %v156_v37 = vmul.f32 0.6931472, %v263_v36 }
 0x257   :  { %v157_v38 = vsub.f32 %v150_v32, %v156_v37 }
 0x259   :  { %158 = vst [vmem:[#allocation8] sm:$0xff] %v157_v38 }
 0x25a   :  { %319 = shalt.err (!%p316_p6)
}
 0x25b   :  { %s320_s15 = scalar_lea.hbm %s413_s3, 128 }
 0x25c   :  { %p321_p7 = scmp.ne.s32.totalorder %s413_s3, %s320_s15  ;;  %p324_p8 = scmp.lt.u32.totalorder %s320_s15, %s413_s3 }
 0x25e   :  { %p326_p9 = pnand %p324_p8, %p321_p7 }
 0x260   :  { %329 = shalt.err (!%p326_p9)
}
 0x261   :  { %168 = dma.vmem_to_hbm [thread:$0]  %s166_s12, 128, %s413_s3, [#allocation5]  }
 0x262   :  { %334 = dma.done.wait [#allocation5], 128  }
 0x263   :  { %335 = vsyncadd [#allocation5], 4294967168 }
 0x264   :  { %172 = vsyncpa [#allocation4], 1 }
 0x265   :  { %173 = vsyncpa [#allocation7], 1 }
 0x266   :  { %174 = vsyncpa [#allocation5], 1 }

</bundles_post_ra>
